<compile_context>
chip_gen: v5e
topology: v5e:2x2
jax: 0.10.0
libtpu: 0.0.40
codegen_flags: <defaults>
</compile_context>

<pallas_src>
import functools
import math

import jax
import jax.numpy as jnp
from jax.experimental import pallas as pl
from jax.experimental.pallas import tpu as pltpu

LANE = 128


def _round_up(n, m=LANE):
    return -(-n // m) * m


def encoder_block_kernel(x_ref, pe_ref,
                         wg1_ref, bg1_ref,
                         w12_ref, b12_ref,
                         w2_ref, b2_ref,
                         o_ref, *, inv_sqrt_d, tq, hp):
    f32, bf16 = jnp.float32, jnp.bfloat16
    qi = pl.program_id(1)
    align = 128 if tq % 128 == 0 else 8
    q0 = pl.multiple_of(qi * tq, align)

    # ---- PositionalEncoding (dropout = identity, eval mode) ----
    # K/V view: full sequence of this batch tile, PE added in f32.
    xk = x_ref[...] + pe_ref[...]                                  # (TB, S, Dp) f32
    xk_bf = xk.astype(bf16)
    # Q view: the TQ-row query chunk handled by this grid step.
    xq = x_ref[:, pl.ds(q0, tq), :] + pe_ref[pl.ds(q0, tq), :]     # (TB, TQ, Dp) f32
    tb = xq.shape[0]

    # ---- self-attention for this q-chunk: softmax(xq xk^T / sqrt(D)) xk ----
    # Scale folded into Q; bf16 MXU operands, f32 accumulation; only a
    # (TB, TQ, S) score/prob tile is live (no full (S, S) materialization).
    q_bf = (xq * inv_sqrt_d).astype(bf16)
    s = jnp.einsum('bqd,bkd->bqk', q_bf, xk_bf,
                   preferred_element_type=f32)                     # (TB, TQ, S)
    s = s - jnp.max(s, axis=-1, keepdims=True)
    p = jnp.exp(s)
    inv_l = pl.reciprocal(jnp.sum(p, axis=-1, keepdims=True), approx=True)
    p = p * inv_l
    attn = jnp.einsum('bqk,bkd->bqd', p.astype(bf16), xk_bf,
                      preferred_element_type=f32)                  # (TB, TQ, Dp)

    # ---- fold batch rows into the MXU M dim for the row-wise sublayers ----
    x2 = xq.reshape(tb * tq, -1)
    attn2 = attn.reshape(tb * tq, -1)

    # ---- Highway connection #1 around the attention sublayer ----
    x2_bf = x2.astype(bf16)
    g1 = jax.nn.sigmoid(
        jnp.dot(x2_bf, wg1_ref[...], preferred_element_type=f32) + bg1_ref[...])
    x2 = x2 + g1 * (attn2 - x2)

    # ---- fused [FFN-W1 | Highway-2 gate] GEMM (one 256-wide N pass) ----
    x2_bf = x2.astype(bf16)
    hw = jnp.dot(x2_bf, w12_ref[...], preferred_element_type=f32) + b12_ref[...]
    h = jnp.maximum(hw[:, :hp], 0.0)                               # relu(x W1 + b1)
    g2 = jax.nn.sigmoid(hw[:, hp:])                                # sigmoid(x Wg2 + bg2)
    ffn = jnp.dot(h.astype(bf16), w2_ref[...],
                  preferred_element_type=f32) + b2_ref[...]

    # ---- Highway connection #2 around the FFN sublayer ----
    x2 = x2 + g2 * (ffn - x2)

    o_ref[...] = x2.reshape(tb, tq, -1).astype(o_ref.dtype)


def _const_spec(shape):
    # Whole-array block, same block index for every (batch, query) grid point.
    return pl.BlockSpec(shape, lambda b, q: (0,) * len(shape))


def _pad2(a, rows, cols, dtype):
    return jnp.pad(a, ((0, rows - a.shape[0]), (0, cols - a.shape[1]))).astype(dtype)


def encoder_block(x, pe, wg1, bg1, w1, b1, w2, b2, wg2, bg2,
                  *, batch_tile=None, q_tile=None):
    B, S, D = x.shape
    H = w1.shape[1]
    assert S % 8 == 0, "S must be a multiple of 8 (f32 sublane tile); pad upstream"

    # Batch tile: aim for >= 2-4 grid steps along batch so DMA/compute overlap and
    # (v7x) megacore can shard the parallel axes across both TensorCores.
    if batch_tile is None:
        TB = max(1, B // 4)
        while B % TB:
            TB -= 1
    else:
        TB = batch_tile
    assert B % TB == 0, "batch_tile must divide batch"

    # Query tile: 128 rows when the sequence allows it, else the whole (short)
    # sequence.  Keeps the live score/prob tile at O(TB*TQ*S) instead of O(TB*S^2).
    # (At real sizes, pick TB so TB*TQ >= 256 to fill the MXU M dimension.)
    if q_tile is None:
        TQ = 128 if S % 128 == 0 else S
    else:
        TQ = q_tile
    assert S % TQ == 0 and TQ % 8 == 0, "q_tile must divide S and be a multiple of 8"

    Dp, Hp = _round_up(D), _round_up(H)
    f32, bf16 = jnp.float32, jnp.bfloat16

    # Wrapper-side layout plumbing: zero-pad to lane-dense (multiple-of-128) trailing
    # dims and store weights in bf16.  Zero padding is exact: pad lanes of x/weights/
    # biases are zero, so pad lanes stay zero through attention, gates and FFN
    # (gate pad lanes evaluate sigmoid(0)=0.5 but multiply (sub - x) = 0).
    xp = jnp.pad(x, ((0, 0), (0, 0), (0, Dp - D)))
    pep = _pad2(pe, S, Dp, f32)
    wg1p, bg1p = _pad2(wg1, Dp, Dp, bf16), _pad2(bg1, 1, Dp, f32)
    w1p, b1p = _pad2(w1, Dp, Hp, bf16), _pad2(b1, 1, Hp, f32)
    w2p, b2p = _pad2(w2, Hp, Dp, bf16), _pad2(b2, 1, Dp, f32)
    wg2p, bg2p = _pad2(wg2, Dp, Dp, bf16), _pad2(bg2, 1, Dp, f32)
    # Fuse FFN-W1 and the highway-2 gate along N: one (Dp, Hp+Dp) GEMM.
    w12p = jnp.concatenate([w1p, wg2p], axis=1)
    b12p = jnp.concatenate([b1p, bg2p], axis=1)

    kernel = functools.partial(encoder_block_kernel,
                               inv_sqrt_d=1.0 / math.sqrt(D), tq=TQ, hp=Hp)

    out_p = pl.pallas_call(
        kernel,
        # bf16 output halves HBM writeback / vst pressure; sliced + cast back below.
        out_shape=jax.ShapeDtypeStruct((B, S, Dp), bf16),
        grid_spec=pltpu.PrefetchScalarGridSpec(
            num_scalar_prefetch=0,
            grid=(B // TB, S // TQ),
            in_specs=[
                # x: full sequence per batch tile (K/V and q-chunk source); block
                # index constant along q, so it's fetched once per batch tile.
                pl.BlockSpec((TB, S, Dp), lambda b, q: (b, 0, 0)),
                _const_spec((S, Dp)),                                   # positional enc
                _const_spec((Dp, Dp)), _const_spec((1, Dp)),            # highway-1 gate
                _const_spec((Dp, Hp + Dp)), _const_spec((1, Hp + Dp)),  # [W1 | Wg2]
                _const_spec((Hp, Dp)), _const_spec((1, Dp)),            # ffn W2, b2
            ],
            out_specs=pl.BlockSpec((TB, TQ, Dp), lambda b, q: (b, q, 0)),
        ),
        compiler_params=pltpu.CompilerParams(
            dimension_semantics=("parallel", "parallel"),
            # Raise v5e's 16 MiB scoped default; stay under v7x's ~56 MiB ceiling.
            vmem_limit_bytes=48 * 1024 * 1024),
    )(xp, pep, wg1p, bg1p, w12p, b12p, w2p, b2p)

    return out_p[..., :D].astype(x.dtype)


def encoder_block_ref(x, pe, wg1, bg1, w1, b1, w2, b2, wg2, bg2):
    # Pure-JAX f32 reference of the module's forward (eval mode).
    x = x + pe
    d = x.shape[-1]
    s = jnp.einsum('bqd,bkd->bqk', x, x) / math.sqrt(d)
    p = jax.nn.softmax(s, axis=-1)
    attn = jnp.einsum('bqk,bkd->bqd', p, x)
    g1 = jax.nn.sigmoid(x @ wg1 + bg1)
    x = g1 * attn + (1.0 - g1) * x
    h = jnp.maximum(x @ w1 + b1, 0.0)
    ffn = h @ w2 + b2
    g2 = jax.nn.sigmoid(x @ wg2 + bg2)
    return g2 * ffn + (1.0 - g2) * x


def sinusoidal_pe(S, D):
    pos = jnp.arange(S, dtype=jnp.float32)[:, None]
    idx = jnp.arange(0, D, 2, dtype=jnp.float32)[None, :]
    div = jnp.exp(-(math.log(10000.0)) * idx / D)
    pe = jnp.zeros((S, D), jnp.float32)
    pe = pe.at[:, 0::2].set(jnp.sin(pos * div))
    pe = pe.at[:, 1::2].set(jnp.cos(pos * div))
    return pe


def init_params(key, D):
    H = D // 2
    ks = jax.random.split(key, 5)
    scale = 0.1
    wg1 = scale * jax.random.normal(ks[0], (D, D), jnp.float32)
    bg1 = jnp.zeros((1, D), jnp.float32)
    w1 = scale * jax.random.normal(ks[1], (D, H), jnp.float32)
    b1 = jnp.zeros((1, H), jnp.float32)
    w2 = scale * jax.random.normal(ks[2], (H, D), jnp.float32)
    b2 = jnp.zeros((1, D), jnp.float32)
    wg2 = scale * jax.random.normal(ks[3], (D, D), jnp.float32)
    bg2 = jnp.zeros((1, D), jnp.float32)
    return wg1, bg1, w1, b1, w2, b2, wg2, bg2


if __name__ == "__main__":
    # small shapes: batch=2, seq=8, dm=32 (ffn hidden = 16)
    B, S, D = 2, 8, 32
    key = jax.random.PRNGKey(0)
    kx, kp = jax.random.split(key)
    x = jax.random.normal(kx, (B, S, D), jnp.float32)
    pe = sinusoidal_pe(S, D)
    params = init_params(kp, D)

    # TODO(synk): dropout (p=0.1) inside PositionalEncoding / HighWay is modelled
    # in eval mode (identity); no stochastic masking is applied.
    out = encoder_block(x, pe, *params)
    jax.block_until_ready(out)
    assert out.shape == (B, S, D)

    # loose tolerance: kernel uses bf16 MXU operands, bf16 output writeback and
    # approx reciprocal; reference is pure f32.
    ref = encoder_block_ref(x, pe, *params)
    err = float(jnp.max(jnp.abs(out - ref)))
    assert err < 0.15, f"max abs error vs f32 reference: {err}"
    print("KERNEL_OK")
</pallas_src>

<mosaic_0001>
module attributes {stable_mosaic.version = 11 : i64} {
  func.func @encoder_block_kernel(%arg0: i32, %arg1: i32, %arg2: memref<1x8x128xf32, #tpu.memory_space<vmem>>, %arg3: memref<8x128xf32, #tpu.memory_space<vmem>>, %arg4: memref<128x128xbf16, #tpu.memory_space<vmem>>, %arg5: memref<1x128xf32, #tpu.memory_space<vmem>>, %arg6: memref<128x256xbf16, #tpu.memory_space<vmem>>, %arg7: memref<1x256xf32, #tpu.memory_space<vmem>>, %arg8: memref<128x128xbf16, #tpu.memory_space<vmem>>, %arg9: memref<1x128xf32, #tpu.memory_space<vmem>>, %arg10: memref<1x8x128xbf16, #tpu.memory_space<vmem>>) attributes {dimension_semantics = [#tpu.dimension_semantics<parallel>, #tpu.dimension_semantics<parallel>], iteration_bounds = array<i64: 2, 1>, scalar_prefetch = 0 : i64, scratch_operands = 0 : i64, tpu.core_type = #tpu.core_type<tc>, window_params = [{transform_indices = @transform_0, window_bounds = array<i64: 1, 8, 128>}, {pipeline_mode = #tpu.pipeline_mode<synchronous>, transform_indices = @transform_1, window_bounds = array<i64: 8, 128>}, {pipeline_mode = #tpu.pipeline_mode<synchronous>, transform_indices = @transform_2, window_bounds = array<i64: 128, 128>}, {pipeline_mode = #tpu.pipeline_mode<synchronous>, transform_indices = @transform_3, window_bounds = array<i64: 1, 128>}, {pipeline_mode = #tpu.pipeline_mode<synchronous>, transform_indices = @transform_4, window_bounds = array<i64: 128, 256>}, {pipeline_mode = #tpu.pipeline_mode<synchronous>, transform_indices = @transform_5, window_bounds = array<i64: 1, 256>}, {pipeline_mode = #tpu.pipeline_mode<synchronous>, transform_indices = @transform_6, window_bounds = array<i64: 128, 128>}, {pipeline_mode = #tpu.pipeline_mode<synchronous>, transform_indices = @transform_7, window_bounds = array<i64: 1, 128>}, {transform_indices = @transform_8, window_bounds = array<i64: 1, 8, 128>}]} {
    %c8_i32 = arith.constant 8 : i32
    %0 = arith.muli %arg1, %c8_i32 : i32
    %1 = tpu.assume_multiple %0, 8 : i32
    %c0 = arith.constant 0 : index
    %c0_0 = arith.constant 0 : index
    %c0_1 = arith.constant 0 : index
    %2 = vector.load %arg2[%c0, %c0_0, %c0_1] : memref<1x8x128xf32, #tpu.memory_space<vmem>>, vector<1x8x128xf32>
    %c0_2 = arith.constant 0 : index
    %c0_3 = arith.constant 0 : index
    %3 = vector.load %arg3[%c0_2, %c0_3] : memref<8x128xf32, #tpu.memory_space<vmem>>, vector<8x128xf32>
    %4 = vector.shape_cast %3 : vector<8x128xf32> to vector<1x8x128xf32>
    %5 = arith.addf %2, %4 : vector<1x8x128xf32>
    %6 = arith.truncf %5 : vector<1x8x128xf32> to vector<1x8x128xbf16>
    %c0_4 = arith.constant 0 : index
    %7 = arith.index_cast %1 : i32 to index
    %c0_5 = arith.constant 0 : index
    %8 = vector.load %arg2[%c0_4, %7, %c0_5] : memref<1x8x128xf32, #tpu.memory_space<vmem>>, vector<1x8x128xf32>
    %9 = arith.index_cast %1 : i32 to index
    %c0_6 = arith.constant 0 : index
    %10 = vector.load %arg3[%9, %c0_6] : memref<8x128xf32, #tpu.memory_space<vmem>>, vector<8x128xf32>
    %11 = vector.shape_cast %10 : vector<8x128xf32> to vector<1x8x128xf32>
    %12 = arith.addf %8, %11 : vector<1x8x128xf32>
    %cst = arith.constant 0.176776692 : f32
    %13 = vector.broadcast %cst : f32 to vector<1x8x128xf32>
    %14 = arith.mulf %12, %13 : vector<1x8x128xf32>
    %15 = arith.truncf %14 : vector<1x8x128xf32> to vector<1x8x128xbf16>
    "tpu.trace_start"() <{level = 10 : i32, message = "bqd,bkd->bqk"}> : () -> ()
    %cst_7 = arith.constant dense<0.000000e+00> : vector<1x8x8xf32>
    %16 = tpu.matmul %15, %6, %cst_7 {dimension_numbers = #tpu.dot_dimension_numbers<[2], [2], [1], [1], [0, 0, 0, 1, 1, 1], [0], [0]>} : vector<1x8x128xbf16>, vector<1x8x128xbf16>, vector<1x8x8xf32> -> vector<1x8x8xf32>
    "tpu.trace_stop"() : () -> ()
    %cst_8 = arith.constant dense<0xFF800000> : vector<1x8xf32>
    %17 = vector.multi_reduction <maximumf>, %16, %cst_8 [2] : vector<1x8x8xf32> to vector<1x8xf32>
    %18 = vector.shape_cast %17 : vector<1x8xf32> to vector<1x8x1xf32>
    %19 = vector.broadcast %18 : vector<1x8x1xf32> to vector<1x8x8xf32>
    %20 = arith.subf %16, %19 : vector<1x8x8xf32>
    %21 = math.exp %20 : vector<1x8x8xf32>
    %cst_9 = arith.constant dense<0.000000e+00> : vector<1x8xf32>
    %22 = vector.multi_reduction <add>, %21, %cst_9 [2] : vector<1x8x8xf32> to vector<1x8xf32>
    %23 = vector.shape_cast %22 : vector<1x8xf32> to vector<1x8x1xf32>
    %24 = tpu.reciprocal %23 {approx = true} : vector<1x8x1xf32> -> vector<1x8x1xf32>
    %25 = vector.broadcast %24 : vector<1x8x1xf32> to vector<1x8x8xf32>
    %26 = arith.mulf %21, %25 : vector<1x8x8xf32>
    %27 = arith.truncf %26 : vector<1x8x8xf32> to vector<1x8x8xbf16>
    "tpu.trace_start"() <{level = 10 : i32, message = "bqk,bkd->bqd"}> : () -> ()
    %cst_10 = arith.constant dense<0.000000e+00> : vector<1x8x128xf32>
    %28 = tpu.matmul %27, %6, %cst_10 {dimension_numbers = #tpu.dot_dimension_numbers<[2], [1], [1], [2], [0, 0, 0, 1, 1, 2], [0], [0]>} : vector<1x8x8xbf16>, vector<1x8x128xbf16>, vector<1x8x128xf32> -> vector<1x8x128xf32>
    "tpu.trace_stop"() : () -> ()
    %29 = vector.shape_cast %12 : vector<1x8x128xf32> to vector<8x128xf32>
    %30 = vector.shape_cast %28 : vector<1x8x128xf32> to vector<8x128xf32>
    %31 = arith.truncf %29 : vector<8x128xf32> to vector<8x128xbf16>
    %c0_11 = arith.constant 0 : index
    %c0_12 = arith.constant 0 : index
    %32 = vector.load %arg4[%c0_11, %c0_12] : memref<128x128xbf16, #tpu.memory_space<vmem>>, vector<128x128xbf16>
    %cst_13 = arith.constant dense<0.000000e+00> : vector<8x128xf32>
    %33 = tpu.matmul %31, %32, %cst_13 {dimension_numbers = #tpu.dot_dimension_numbers<[1], [0], [0], [1], [0, 0, 1, 1], [], []>} : vector<8x128xbf16>, vector<128x128xbf16>, vector<8x128xf32> -> vector<8x128xf32>
    %c0_14 = arith.constant 0 : index
    %c0_15 = arith.constant 0 : index
    %34 = vector.load %arg5[%c0_14, %c0_15] : memref<1x128xf32, #tpu.memory_space<vmem>>, vector<1x128xf32>
    %35 = vector.broadcast %34 : vector<1x128xf32> to vector<8x128xf32>
    %36 = arith.addf %33, %35 : vector<8x128xf32>
    %37 = arith.negf %36 : vector<8x128xf32>
    %38 = math.exp %37 : vector<8x128xf32>
    %cst_16 = arith.constant 1.000000e+00 : f32
    %39 = vector.broadcast %cst_16 : f32 to vector<8x128xf32>
    %40 = arith.addf %39, %38 : vector<8x128xf32>
    %41 = arith.divf %39, %40 : vector<8x128xf32>
    %42 = arith.subf %30, %29 : vector<8x128xf32>
    %43 = arith.mulf %41, %42 : vector<8x128xf32>
    %44 = arith.addf %29, %43 : vector<8x128xf32>
    %45 = arith.truncf %44 : vector<8x128xf32> to vector<8x128xbf16>
    %c0_17 = arith.constant 0 : index
    %c0_18 = arith.constant 0 : index
    %46 = vector.load %arg6[%c0_17, %c0_18] : memref<128x256xbf16, #tpu.memory_space<vmem>>, vector<128x256xbf16>
    %cst_19 = arith.constant dense<0.000000e+00> : vector<8x256xf32>
    %47 = tpu.matmul %45, %46, %cst_19 {dimension_numbers = #tpu.dot_dimension_numbers<[1], [0], [0], [1], [0, 0, 1, 1], [], []>} : vector<8x128xbf16>, vector<128x256xbf16>, vector<8x256xf32> -> vector<8x256xf32>
    %c0_20 = arith.constant 0 : index
    %c0_21 = arith.constant 0 : index
    %48 = vector.load %arg7[%c0_20, %c0_21] : memref<1x256xf32, #tpu.memory_space<vmem>>, vector<1x256xf32>
    %49 = vector.broadcast %48 : vector<1x256xf32> to vector<8x256xf32>
    %50 = arith.addf %47, %49 : vector<8x256xf32>
    %51 = vector.extract_strided_slice %50 {offsets = [0, 0], sizes = [8, 128], strides = [1, 1]} : vector<8x256xf32> to vector<8x128xf32>
    %cst_22 = arith.constant 0.000000e+00 : f32
    %52 = vector.broadcast %cst_22 : f32 to vector<8x128xf32>
    %53 = arith.maximumf %51, %52 : vector<8x128xf32>
    %54 = vector.extract_strided_slice %50 {offsets = [0, 128], sizes = [8, 128], strides = [1, 1]} : vector<8x256xf32> to vector<8x128xf32>
    %55 = arith.negf %54 : vector<8x128xf32>
    %56 = math.exp %55 : vector<8x128xf32>
    %cst_23 = arith.constant 1.000000e+00 : f32
    %57 = vector.broadcast %cst_23 : f32 to vector<8x128xf32>
    %58 = arith.addf %57, %56 : vector<8x128xf32>
    %59 = arith.divf %57, %58 : vector<8x128xf32>
    %60 = arith.truncf %53 : vector<8x128xf32> to vector<8x128xbf16>
    %c0_24 = arith.constant 0 : index
    %c0_25 = arith.constant 0 : index
    %61 = vector.load %arg8[%c0_24, %c0_25] : memref<128x128xbf16, #tpu.memory_space<vmem>>, vector<128x128xbf16>
    %cst_26 = arith.constant dense<0.000000e+00> : vector<8x128xf32>
    %62 = tpu.matmul %60, %61, %cst_26 {dimension_numbers = #tpu.dot_dimension_numbers<[1], [0], [0], [1], [0, 0, 1, 1], [], []>} : vector<8x128xbf16>, vector<128x128xbf16>, vector<8x128xf32> -> vector<8x128xf32>
    %c0_27 = arith.constant 0 : index
    %c0_28 = arith.constant 0 : index
    %63 = vector.load %arg9[%c0_27, %c0_28] : memref<1x128xf32, #tpu.memory_space<vmem>>, vector<1x128xf32>
    %64 = vector.broadcast %63 : vector<1x128xf32> to vector<8x128xf32>
    %65 = arith.addf %62, %64 : vector<8x128xf32>
    %66 = arith.subf %65, %44 : vector<8x128xf32>
    %67 = arith.mulf %59, %66 : vector<8x128xf32>
    %68 = arith.addf %44, %67 : vector<8x128xf32>
    %69 = vector.shape_cast %68 : vector<8x128xf32> to vector<1x8x128xf32>
    %70 = arith.truncf %69 : vector<1x8x128xf32> to vector<1x8x128xbf16>
    %c0_29 = arith.constant 0 : index
    %c0_30 = arith.constant 0 : index
    %c0_31 = arith.constant 0 : index
    %71 = vector.load %arg10[%c0_29, %c0_30, %c0_31] : memref<1x8x128xbf16, #tpu.memory_space<vmem>>, vector<1x8x128xbf16>
    tpu.vector_store %arg10[%c0_29, %c0_30, %c0_31], %70 {strides = array<i32>} : memref<1x8x128xbf16, #tpu.memory_space<vmem>>, vector<1x8x128xbf16>,
    return
  }
  func.func @transform_0(%arg0: i32, %arg1: i32) -> (i32, i32, i32) {
    %c0_i32 = arith.constant 0 : i32
    %c0_i32_0 = arith.constant 0 : i32
    %c0_i32_1 = arith.constant 0 : i32
    return %arg0, %c0_i32, %c0_i32_0 : i32, i32, i32
  }
  func.func @transform_1(%arg0: i32, %arg1: i32) -> (i32, i32) {
    %c0_i32 = arith.constant 0 : i32
    %c0_i32_0 = arith.constant 0 : i32
    %c0_i32_1 = arith.constant 0 : i32
    return %c0_i32, %c0_i32_0 : i32, i32
  }
  func.func @transform_2(%arg0: i32, %arg1: i32) -> (i32, i32) {
    %c0_i32 = arith.constant 0 : i32
    %c0_i32_0 = arith.constant 0 : i32
    %c0_i32_1 = arith.constant 0 : i32
    return %c0_i32, %c0_i32_0 : i32, i32
  }
  func.func @transform_3(%arg0: i32, %arg1: i32) -> (i32, i32) {
    %c0_i32 = arith.constant 0 : i32
    %c0_i32_0 = arith.constant 0 : i32
    %c0_i32_1 = arith.constant 0 : i32
    return %c0_i32, %c0_i32_0 : i32, i32
  }
  func.func @transform_4(%arg0: i32, %arg1: i32) -> (i32, i32) {
    %c0_i32 = arith.constant 0 : i32
    %c0_i32_0 = arith.constant 0 : i32
    %c0_i32_1 = arith.constant 0 : i32
    return %c0_i32, %c0_i32_0 : i32, i32
  }
  func.func @transform_5(%arg0: i32, %arg1: i32) -> (i32, i32) {
    %c0_i32 = arith.constant 0 : i32
    %c0_i32_0 = arith.constant 0 : i32
    %c0_i32_1 = arith.constant 0 : i32
    return %c0_i32, %c0_i32_0 : i32, i32
  }
  func.func @transform_6(%arg0: i32, %arg1: i32) -> (i32, i32) {
    %c0_i32 = arith.constant 0 : i32
    %c0_i32_0 = arith.constant 0 : i32
    %c0_i32_1 = arith.constant 0 : i32
    return %c0_i32, %c0_i32_0 : i32, i32
  }
  func.func @transform_7(%arg0: i32, %arg1: i32) -> (i32, i32) {
    %c0_i32 = arith.constant 0 : i32
    %c0_i32_0 = arith.constant 0 : i32
    %c0_i32_1 = arith.constant 0 : i32
    return %c0_i32, %c0_i32_0 : i32, i32
  }
  func.func @transform_8(%arg0: i32, %arg1: i32) -> (i32, i32, i32) {
    %c0_i32 = arith.constant 0 : i32
    %c0_i32_0 = arith.constant 0 : i32
    return %arg0, %arg1, %c0_i32 : i32, i32, i32
  }
}

</mosaic_0001>

<bundles_post_ra>
// kernel: tpu_custom_call.1
= control target key start
LH: loop header
LB: loop body
LE: loop exit
PB: predicated region body
PF: predicated region fallthrough
CT: control target
= control target key end

     0   :  { %s1724_s0 = inlined_call_operand.hbm [shape: f32[2,8,128], index: 0, kind: input, shape index: {}]   ;;  %s1725_s1 = inlined_call_operand.hbm [shape: f32[8,128], index: 1, kind: input, shape index: {}]   ;;  %s1726_s2 = inlined_call_operand.hbm [shape: bf16[128,128], index: 2, kind: input, shape index: {}]   ;;  %s1727_s3 = inlined_call_operand.vmem [shape: f32[1,128], index: 3, kind: input, shape index: {}]   ;;  %s1728_s4 = inlined_call_operand.hbm [shape: bf16[128,256], index: 4, kind: input, shape index: {}]   ;;  %s1729_s5 = inlined_call_operand.vmem [shape: f32[1,256], index: 5, kind: input, shape index: {}]   ;;  %s1730_s6 = inlined_call_operand.hbm [shape: bf16[128,128], index: 6, kind: input, shape index: {}]   ;;  %s1731_s7 = inlined_call_operand.vmem [shape: f32[1,128], index: 7, kind: input, shape index: {}]   ;;  %s1732_s8 = inlined_call_operand.hbm [shape: bf16[2,8,128], index: 8, kind: output, shape index: {}]  }
   0x1   :  { %1733 = sst [smem:[#allocation16_spill]] %s1725_s1 }
   0x2   :  { %1734 = sst [smem:[#allocation17_spill]] %s1726_s2 }
   0x3   :  { %1735 = sst [smem:[#allocation18_spill]] %s1728_s4 }
   0x4   :  { %13 = vsyncpa [#allocation3], 0 }
   0x5   :  { %15 = vsyncpa [#allocation3 + $0x1], 0 }
   0x6   :  { %16 = vsyncpa [#allocation6], 0 }
   0x7   :  { %17 = vsyncpa [#allocation9], 0 }
   0x8   :  { %18 = vsyncpa [#allocation4], 0 }
   0x9   :  { %20 = vsyncpa [#allocation4 + $0x1], 0  ;;  %s1538_s27 = smov 0   ;;  %s1540_s28 = smov 0  }
   0xa   :  { %s1542_s29 = smov 0   ;;  %s1544_s30 = smov 0  }
   0xb   :  { %s1546_s9 = smov 0   ;;  %s1548_s10 = smov 0  }
   0xc LB: > { %s938_s11 = sadd.s32 4294967295, %s1483_s10   ;;  %p940_p0 = scmp.ge.s32.totalorder %s1483_s10, 1  ;;  %s1483_s10 = sphi %s1548_s10, %s26_s10   ;;  %s1479_s9 = sphi %s1546_s9, %s1749_s9   ;;  %s1475_s30 = sphi %s1544_s30, %s1748_s30   ;;  %s1471_s29 = sphi %s1542_s29, %s1747_s29   ;;  %s1467_s28 = sphi %s1540_s28, %s1746_s28   ;;  %s1463_s27 = sphi %s1538_s27, %s1745_s27  }
   0xd   : > { %p1572_p1 = scmp.eq.s32.totalorder %s938_s11, 0  ;;  %p244_p2 = scmp.lt.s32.totalorder %s1483_s10, 3 }
   0xe   : > { %s1737_s1 = sld [smem:[#allocation16_spill]]  ;;  %p945_p4 = scmp.ge.s32.totalorder %s1483_s10, 2 }
   0xf   : > { %p1580_p3 = pnand %p940_p0, %p244_p2  ;;  %s1485_s17 = smov [#allocation5]  }
  0x10   : > { %s258_s18 = sshll.u32 %s1485_s17, 4  ;;  %s1739_s4 = sld [smem:[#allocation18_spill]]  ;;  %s259_s18 = int_to_ptr.vmem [resolvable:$true] %s258_s18 }
  0x11   : > { %p1142_p5 = pneg %p1580_p3  ;;  %s1486_s23 = smov [#allocation8]  }
  0x12   : > { %s286_s24 = sshll.u32 %s1486_s23, 4  ;;  %s1487_s25 = smov 128   ;;  %s287_s24 = int_to_ptr.vmem [resolvable:$true] %s286_s24 }
  0x13   : > { %p1592_p6 = pnand %p1142_p5, %p1572_p1  ;;  %s1488_s26 = smov 8  }
  0x14   : > { %s256_s15 = sshll.u32 %s1737_s1, 4  ;;  %s1741_s2 = sld [smem:[#allocation17_spill]]  ;;  %s257_s15 = int_to_ptr.hbm [resolvable:$true] %s256_s15 }
  0x15   : > { %1145 = dma.hbm_to_vmem [thread:$0]  (!%p1592_p6), %s257_s15, 128, %s259_s18, [#allocation6]  }
  0x16   : > { %s284_s21 = sshll.u32 %s1739_s4, 4  ;;  %s1489_s19 = smov [#allocation7]   ;;  %s285_s21 = int_to_ptr.hbm [resolvable:$true] %s284_s21 }
  0x17   : > { %1151 = dma.hbm_to_vmem [thread:$0]  (!%p1592_p6), %s285_s21, 2048, %s287_s24, [#allocation9], %s1487_s25, %s1487_s25, %s1488_s26  }
  0x18   : > { %s269_s20 = sshll.u32 %s1489_s19, 4  ;;  %s301_s23 = sshll.u32 %s1730_s6, 4  ;;  %s270_s20 = int_to_ptr.vmem [resolvable:$true] %s269_s20  ;;  %s302_s23 = int_to_ptr.hbm [resolvable:$true] %s301_s23 }
  0x19   : > { %s1490_s21 = smov 64   ;;  %s1491_s24 = smov 4  }
  0x1a   : > { %s267_s17 = sshll.u32 %s1741_s2, 4  ;;  %s1492_s25 = smov [#allocation10]   ;;  %s268_s17 = int_to_ptr.hbm [resolvable:$true] %s267_s17 }
  0x1b   : > { %1148 = dma.hbm_to_vmem [thread:$0]  (!%p1592_p6), %s268_s17, 1024, %s270_s20, [#allocation6], %s1490_s21, %s1490_s21, %s1491_s24  }
  0x1c   : > { %s303_s26 = sshll.u32 %s1492_s25, 4  ;;  %s38_s13 = sadd.s32 1, %s1479_s9  ;;  %s304_s26 = int_to_ptr.vmem [resolvable:$true] %s303_s26 }
  0x1d   : > { %1154 = dma.hbm_to_vmem [thread:$0]  (!%p1592_p6), %s302_s23, 1024, %s304_s26, [#allocation9], %s1490_s21, %s1490_s21, %s1491_s24  }
  0x1e   : > { %s939_s14 = sadd.s32 4294967294, %s1483_s10   ;;  %p40_p7 = scmp.ge.s32.totalorder %s38_s13, 2 }
  0x1f   : > { %s45_s19 = sadd.s32 1, %s1471_s29  ;;  %p52_p8 = scmp.ne.s32.totalorder %s1471_s29, %s1467_s28 }
  0x20   : > { %s1751_s13 = smov (%p40_p7, %s38_s13), 0  ;;  %p53_p9 = scmp.eq.s32.totalorder %s1483_s10, 0 }
  0x21   : > { %p58_p10 = scmp.ne.s32.totalorder %s1467_s28, %s1463_s27  ;;  %s42_s17 = ssub.s32 %s1479_s9, %s1751_s13 }
  0x22   : > { %p231_p11 = scmp.eq.s32.totalorder %s938_s11, 1  ;;  %p43_p12 = scmp.eq.s32.totalorder %s42_s17, 0 }
  0x23   : > { %p1626_p13 = por %p1572_p1, %p58_p10  ;;  %p237_p2 = scmp.eq.s32.totalorder %s939_s14, 1 }
  0x24   : > { %p1630_p0 = por %p231_p11, %p52_p8  ;;  %p54_p5 = por %p53_p9, %p52_p8 }
  0x25   : > { %s1635_s15 = scalar_select %p43_p12, %s1471_s29, %s45_s19  }
  0x26   : > { %p1637_p6 = por %p237_p2, %p58_p10  ;;  %s320_s23 = sand.u32 1, %s1471_s29  }
  0x27   : > { %s947_s11 = sshll.u32 %s1479_s9, 3  ;;  %p1167_p7 = scmp.lt.s32.totalorder %s1483_s10, 2 }
  0x28   : > { %s946_s21 = sshll.u32 %s320_s23, 3  ;;  %s328_s26 = scalar_lea.hbm %s1724_s0, %s947_s11 }
  0x29   : > { %s330_s17 = sshll.u32 %s328_s26, 4  ;;  %s324_s1 = scalar_lea.vmem [#allocation2], %s946_s21  ;;  %s331_s17 = int_to_ptr.hbm [resolvable:$true] %s330_s17 }
  0x2a   : > { %s332_s2 = sshll.u32 %s324_s1, 4  ;;  %p1156_p11 = pnand %p1167_p7, %p54_p5  ;;  %s333_s2 = int_to_ptr.vmem [resolvable:$true] %s332_s2 }
  0x2b   : > { %s321_s14 = scalar_lea.sflag [#allocation3], %s320_s23  ;;  %341 = sbr.rel (%p1580_p3) target bundleno = 858 (0x35a), region = 52 }
  0x2c   : > { %1158 = dma.hbm_to_vmem [thread:$0]  (!%p1156_p11), %s331_s17, 128, %s333_s2, %s321_s14  }
  0x2d   : > { %s1650_s19 = sand.u32 (!%p1580_p3), 1, %s1467_s28  }
  0x2e   : > { %s949_s4 = sshll.u32 (!%p1580_p3), %s1650_s19, 3  ;;  %s344_s24 = scalar_lea.sflag (!%p1580_p3), [#allocation3], %s1650_s19 }
  0x2f   : > { %s347_s11 = scalar_lea.vmem (!%p1580_p3), [#allocation2], %s949_s4 }
  0x30   : > { %1446 = dma.done.wait (%p1626_p13), %s344_s24, 128  }
  0x31   : > { %1448 = vsyncadd (%p1626_p13), %s344_s24, 4294967168 }
  0x32   : > { %1450 = dma.done.wait (%p1572_p1), [#allocation6], 1152  }
  0x33   : > { %1452 = vsyncadd (%p1572_p1), [#allocation6], 4294966144 }
  0x34   : > { %1454 = dma.done.wait (%p1572_p1), [#allocation9], 3072  }
  0x35   : > { %1456 = vsyncadd (%p1572_p1), [#allocation9], 4294964224  ;;  %v403_v0 = vld [vmem:[%s347_s11] sm:$0xff]  ;;  %v404_v1 = vld [vmem:[#allocation5] sm:$0xff]  ;;  %vm427_vm0 = vcmask 64512   ;;  %vm443_vm1 = vcmask 1043456  }
  0x36   : > { %v1666_v2 = vadd.f32 %v404_v1, %v403_v0  ;;  %v1097_v9 = vld [vmem:[#allocation7 + $0x38] sm:$0xff]  ;;  %v1096_v10 = vld [vmem:[#allocation7 + $0x30] sm:$0xff]  ;;  %v1095_v11 = vld [vmem:[#allocation7 + $0x28] sm:$0xff]  ;;  %s954_s23 = sshll.u32 %s1650_s19, 2  ;;  %s1087_s21 = sshll.u32 %s1475_s30, 2 }
  0x37   : > { %529 = vmatpush.bf16.msra.mxu2 %v1097_v9  ;;  %v1094_v12 = vld [vmem:[#allocation7 + $0x20] sm:$0xff]  ;;  %v1093_v13 = vld [vmem:[#allocation7 + $0x18] sm:$0xff]  ;;  %v1092_v14 = vld [vmem:[#allocation7 + $0x10] sm:$0xff]  ;;  %s812_s17 = scalar_lea.hbm %s1732_s8, %s1087_s21  ;;  %s400_s14 = scalar_lea.vmem [#allocation11], %s954_s23 }
  0x38   : > { %v406_v3 = vpack.c.bf16 %v1666_v2, %v1666_v2  ;;  %v412_v4 = vmul.f32 0.17677669, %v1666_v2  ;;  %v1091_v18 = vld [vmem:[#allocation7 + $0x8] sm:$0xff]  ;;  %v1090_v19 = vld [vmem:[#allocation7] sm:$0xff]  ;;  %v1047_v23 = vld [vmem:[#allocation8 + $0x70] sm:$0xf] }
  0x39   : > { %v1113_v24 = vld [vmem:[#allocation8 + $0x74] sm:$0xf0]  ;;  %v1112_v25 = vld [vmem:[#allocation8 + $0x74] sm:$0xf]  ;;  %v1049_v28 = vld [vmem:[#allocation8 + $0x78] sm:$0xf0] }
  0x3a   : > { %421 = vmatpush.bf16.xpose.msra.mxu0 %v406_v3  ;;  %v413_v5 = vpack.c.bf16 %v412_v4, %v412_v4  ;;  %v445_v22 = vsel %vm443_vm1, %v406_v3, 0  ;;  %v1048_v27 = vor.u32 %v1113_v24, %v1047_v23  ;;  %v1039_v29 = vld [vmem:[#allocation8 + $0x60] sm:$0xf]  ;;  %v1111_v30 = vld [vmem:[#allocation8 + $0x64] sm:$0xf0]  ;;  %v1052_v31 = vor.u32 %v1112_v25, %v1049_v28  ;;  %s814_s24 = sshll.u32 %s400_s14, 4  ;;  %s815_s24 = int_to_ptr.vmem [resolvable:$true] %s814_s24 }
  0x3b   : > { %530 = vmatpush.bf16.msra.mxu2 %v1096_v10  ;;  %454 = vmatpush.bf16.msra.mxu1 %v445_v22  ;;  %v1110_v32 = vld [vmem:[#allocation8 + $0x64] sm:$0xf]  ;;  %v1041_v33 = vld [vmem:[#allocation8 + $0x68] sm:$0xf0]  ;;  %v1040_v34 = vor.u32 %v1111_v30, %v1039_v29  ;;  %v1031_v36 = vld [vmem:[#allocation8 + $0x50] sm:$0xf] }
  0x3c   : > { %667 = vmatpush.bf16.msra.mxu3 %v1048_v27  ;;  %v1044_v35 = vor.u32 %v1110_v32, %v1041_v33  ;;  %v1109_v37 = vld [vmem:[#allocation8 + $0x54] sm:$0xf0]  ;;  %v1108_v38 = vld [vmem:[#allocation8 + $0x54] sm:$0xf]  ;;  %v1033_v39 = vld [vmem:[#allocation8 + $0x58] sm:$0xf0] }
  0x3d   : > { %v1032_v40 = vor.u32 %v1109_v37, %v1031_v36  ;;  %v1036_v42 = vor.u32 %v1108_v38, %v1033_v39  ;;  %v1023_v43 = vld [vmem:[#allocation8 + $0x40] sm:$0xf]  ;;  %v1107_v44 = vld [vmem:[#allocation8 + $0x44] sm:$0xf0]  ;;  %v1106_v46 = vld [vmem:[#allocation8 + $0x44] sm:$0xf] }
  0x3e   : > { %v1025_v47 = vld [vmem:[#allocation8 + $0x48] sm:$0xf0]  ;;  %v1024_v49 = vor.u32 %v1107_v44, %v1023_v43  ;;  %v1015_v51 = vld [vmem:[#allocation8 + $0x30] sm:$0xf]  ;;  %v1105_v52 = vld [vmem:[#allocation8 + $0x34] sm:$0xf0] }
  0x3f   : > { %531 = vmatpush.bf16.msra.mxu2 %v1095_v11  ;;  %680 = vmatpush.bf16.msrb.mxu1 %v1052_v31  ;;  %v1028_v50 = vor.u32 %v1106_v46, %v1025_v47  ;;  %v1104_v53 = vld [vmem:[#allocation8 + $0x34] sm:$0xf]  ;;  %v1017_v54 = vld [vmem:[#allocation8 + $0x38] sm:$0xf0]  ;;  %v1016_v55 = vor.u32 %v1105_v52, %v1015_v51  ;;  %v1007_v57 = vld [vmem:[#allocation8 + $0x20] sm:$0xf] }
  0x40   : > { %668 = vmatpush.bf16.msra.mxu3 %v1040_v34  ;;  %v1020_v56 = vor.u32 %v1104_v53, %v1017_v54  ;;  %v1103_v58 = vld [vmem:[#allocation8 + $0x24] sm:$0xf0]  ;;  %v1102_v59 = vld [vmem:[#allocation8 + $0x24] sm:$0xf]  ;;  %v1009_v60 = vld [vmem:[#allocation8 + $0x28] sm:$0xf0] }
  0x41   : > { %422 = vmatmul.bf16.vlgmr.msra.gmra.mxu0 %v413_v5  ;;  %v1008_v62 = vor.u32 %v1103_v58, %v1007_v57  ;;  %v1012_v63 = vor.u32 %v1102_v59, %v1009_v60  ;;  %v1229_v1 = vld [vmem:[%s1727_s3] ss:$0 sm:$0xff]  ;;  %v1001_v10 = vld [vmem:[#allocation8 + $0x18] sm:$0xf0]  ;;  %v1118_v25 = vld [vmem:[#allocation10 + $0x20] sm:$0xff]  ;;  %s816_s11 = sshll.u32 %s812_s17, 4  ;;  %s817_s11 = int_to_ptr.hbm [resolvable:$true] %s816_s11 }
  0x42   : > { %v1119_v23 = vld [vmem:[#allocation10 + $0x28] sm:$0xff]  ;;  %v1117_v27 = vld [vmem:[#allocation10 + $0x18] sm:$0xff]  ;;  %s801_s30 = scalar_lea.sflag [#allocation4], %s1650_s19  ;;  %s1407_s1 = sshra.s32 %s817_s11, 4  ;;  %s1408_s1 = int_to_ptr.hbm [resolvable:$true] %s1407_s1 }
  0x43   : > { %532 = vmatpush.bf16.msra.mxu2 %v1094_v12  ;;  %681 = vmatpush.bf16.msrb.mxu1 %v1044_v35  ;;  %v581_v44 = vld [vmem:[%s1729_s5] sm:$0x3]  ;;  %s1409_s2 = scalar_lea.hbm %s1408_s1, 4  ;;  %s1413_s16 = scalar_lea.hbm %s1732_s8, 8 }
  0x44   : > { %669 = vmatpush.bf16.msra.mxu3 %v1032_v40  ;;  %v1116_v40 = vld [vmem:[#allocation10 + $0x10] sm:$0xff]  ;;  %v584_v51 = vperm.slane %v581_v44, 1  ;;  %p1410_p1 = scmp.ne.s32.totalorder %s1408_s1, %s1409_s2  ;;  %p1414_p9 = scmp.lt.s32.totalorder %s1408_s1, %s1732_s8 }
  0x45   : > { %p1415_p10 = scmp.lt.s32.totalorder %s1413_s16, %s1409_s2 }
  0x46   : > { %p1411_p3 = pnand %p1410_p1, %p1630_p0 }
  0x47   : > { %533 = vmatpush.bf16.msra.mxu2 %v1093_v13  ;;  %682 = vmatpush.bf16.msrb.mxu1 %v1036_v42  ;;  %v991_v13 = vld [vmem:[#allocation8] sm:$0xf]  ;;  %p1416_p12 = por %p1415_p10, %p1414_p9 }
  0x48   : > { %670 = vmatpush.bf16.msra.mxu3 %v1024_v49  ;;  %v1114_v42 = vld [vmem:[#allocation10] sm:$0xff]  ;;  %p1412_p8 = pneg %p1411_p3 }
  0x4a   : > { %p1417_p13 = pnand %p1416_p12, %p1412_p8 }
  0x4b   : > { %534 = vmatpush.bf16.msra.mxu2 %v1092_v14  ;;  %683 = vmatpush.bf16.msrb.mxu1 %v1028_v50  ;;  %v1099_v14 = vld [vmem:[#allocation8 + $0x4] sm:$0xf0] }
  0x4c   : > { %671 = vmatpush.bf16.msra.mxu3 %v1016_v55 }
  0x4f   : > { %535 = vmatpush.bf16.msra.mxu2 %v1091_v18  ;;  %684 = vmatpush.bf16.msrb.mxu1 %v1020_v56 }
  0x50   : > { %672 = vmatpush.bf16.msra.mxu3 %v1008_v62 }
  0x53   : > { %536 = vmatpush.bf16.msra.mxu2 %v1090_v19  ;;  %685 = vmatpush.bf16.msrb.mxu1 %v1012_v63  ;;  %v1121_v19 = vld [vmem:[#allocation10 + $0x38] sm:$0xff] }
  0x54   : > { %782 = vmatpush.bf16.msrb.mxu0 %v1121_v19 }
  0x56   : > { %537 = vmatmul.bf16.vlgmr.msra.gmra.mxu2 %v406_v3 }
  0xbe   : > { %v423_v6 = vpop.f32.mrf.mxu0 }
  0xbf   : > { %v428_v7 = vsel %vm427_vm0, %v423_v6, -inf }
  0xc0   : > { %429 = vmax.xlane.f32.xlu0 %v428_v7  ;;  %v1101_v7 = vld [vmem:[#allocation8 + $0x14] sm:$0xf0] }
  0xc6   : > { %v425_v8 = vpop.f32.mrf.mxu0 }
  0xc7   : > { %v1100_v8 = vld [vmem:[#allocation8 + $0x14] sm:$0xf] }
  0xc8   : > { %v1004_v11 = vor.u32 %v1100_v8, %v1001_v10 }
  0xca   : > { %686 = vmatpush.bf16.msrb.mxu1 %v1004_v11 }
  0xd9   : > { %v538_v61 = vpop.f32.mrf.mxu2 }
  0xda   : > { %v539_v3 = vadd.f32 %v1229_v1, %v538_v61  ;;  %v1230_v61 = vld [vmem:[%s1731_s7] ss:$0 sm:$0xff] }
  0xdc   : > { %v988_v4 = vmul.f32 -1.442695, %v539_v3 }
  0xe1   : > { %v540_v0 = vpop.f32.mrf.mxu2 }
 0x133   : > { %v430_v15 = vpop.xlane.xlu0 %429 }
 0x134   : > { %v431_v16 = vsub.f32 %v423_v6, %v430_v15  ;;  %v999_v6 = vld [vmem:[#allocation8 + $0x10] sm:$0xf]  ;;  %v1098_v15 = vld [vmem:[#allocation8 + $0x4] sm:$0xf] }
 0x135   : > { %v1000_v9 = vor.u32 %v1101_v7, %v999_v6 }
 0x136   : > { %v432_v17 = vmul.f32 1.442695, %v431_v16  ;;  %v992_v16 = vor.u32 %v1099_v14, %v991_v13 }
 0x137   : > { %673 = vmatpush.bf16.msra.mxu3 %v1000_v9 }
 0x138   : > { %1231 = vpow2.f32 %v432_v17  ;;  %v993_v17 = vld [vmem:[#allocation8 + $0x8] sm:$0xf0] }
 0x139   : > { %v996_v18 = vor.u32 %v1098_v15, %v993_v17 }
 0x13b   : > { %674 = vmatpush.bf16.msra.mxu3 %v992_v16  ;;  %687 = vmatpush.bf16.msrb.mxu1 %v996_v18 }
 0x13e   : > { %v1232_v20 = vpop.eup %1231 }
 0x13f   : > { %v434_v21 = vsel %vm427_vm0, %v1232_v20, 0.0 }
 0x140   : > { %435 = vadd.xlane.f32.xlu0 %v434_v21 }
 0x1b3   : > { %v436_v26 = vpop.xlane.xlu0 %435 }
 0x1b4   : > { %1233 = vrcp.f32 %v436_v26 }
 0x1b5   : > { %1235 = vpow2.f32 %v988_v4 }
 0x1ba   : > { %v1234_v41 = vpop.eup %1233 }
 0x1bb   : > { %v438_v45 = vmul.f32 %v1234_v41, %v1232_v20  ;;  %v1236_v5 = vpop.eup %1235  ;;  %v1120_v20 = vld [vmem:[#allocation10 + $0x30] sm:$0xff]  ;;  %v1115_v41 = vld [vmem:[#allocation10 + $0x8] sm:$0xff] }
 0x1bc   : > { %v545_v12 = vadd.f32 1.0, %v1236_v5  ;;  %783 = vmatpush.bf16.msrb.mxu0 %v1120_v20 }
 0x1bd   : > { %v439_v48 = vpack.c.bf16 %v438_v45, %v438_v45  ;;  %v583_v45 = vperm.slane %v581_v44, 0 }
 0x1be   : > { %1237 = vrcp.f32 %v545_v12  ;;  %vm551_vm2 = vweird.f32 %v545_v12  ;;  %v557_v28 = vand.u32 2147483648, %v545_v12  ;;  %v555_v30 = vand.u32 2147483647, %v545_v12 }
 0x1bf   : > { %955 = vmatmul.msk.bf16.vlgmr.msra.gmra.mxu1 %vm427_vm0, %v439_v48 }
 0x1c0   : > { %784 = vmatpush.bf16.msrb.mxu0 %v1119_v23  ;;  %v558_v31 = vor.u32 1.1754944e-38, %v557_v28  ;;  %vm556_vm5 = vcmp.eq.f32.partialorder %v555_v30, 8.507059e+37 }
 0x1c4   : > { %v1238_v21 = vpop.eup %1237  ;;  %785 = vmatpush.bf16.msrb.mxu0 %v1118_v25 }
 0x1c5   : > { %v547_v22 = vmul.f32 %v1238_v21, %v545_v12  ;;  %vm552_vm3 = vweird.f32 %v1238_v21 }
 0x1c6   : > { %vm553_vm4 = vmor %vm551_vm2, %vm552_vm3 }
 0x1c7   : > { %v548_v24 = vsub.f32 1.0, %v547_v22 }
 0x1c8   : > { %786 = vmatpush.bf16.msrb.mxu0 %v1117_v27 }
 0x1c9   : > { %v549_v26 = vmul.f32 %v1238_v21, %v548_v24 }
 0x1cb   : > { %v550_v29 = vadd.f32 %v1238_v21, %v549_v26 }
 0x1cc   : > { %787 = vmatpush.bf16.msrb.mxu0 %v1116_v40 }
 0x1cd   : > { %v554_v32 = vsel %vm553_vm4, %v1238_v21, %v550_v29 }
 0x1ce   : > { %v559_v35 = vsel %vm556_vm5, %v558_v31, %v554_v32 }
 0x1d0   : > { %788 = vmatpush.bf16.msrb.mxu0 %v1115_v41 }
 0x1d4   : > { %789 = vmatpush.bf16.msrb.mxu0 %v1114_v42 }
 0x23c   : > { %v456_v33 = vpop.f32.mrf.mxu1 }
 0x23d   : > { %v561_v34 = vsub.f32 %v456_v33, %v1666_v2 }
 0x23f   : > { %v562_v36 = vmul.f32 %v561_v34, %v559_v35 }
 0x241   : > { %v563_v37 = vadd.f32 %v562_v36, %v1666_v2 }
 0x243   : > { %v564_v38 = vpack.c.bf16 %v563_v37, %v563_v37 }
 0x244   : > { %v458_v39 = vpop.f32.mrf.mxu1 }
 0x245   : > { %675 = vmatmul.bf16.vlgmr.msra.gmra.mxu3 %v564_v38  ;;  %688 = vmatmul.bf16.vlgmr.msrb.gmra.mxu1 %v564_v38 }
 0x2c2   : > { %v689_v43 = vpop.f32.mrf.mxu1 }
 0x2c3   : > { %v690_v52 = vadd.f32 %v689_v43, %v584_v51 }
 0x2c5   : > { %v1053_v53 = vmul.f32 -1.442695, %v690_v52 }
 0x2c7   : > { %1239 = vpow2.f32 %v1053_v53 }
 0x2c8   : > { %v676_v46 = vpop.f32.mrf.mxu3 }
 0x2c9   : > { %v677_v47 = vadd.f32 %v676_v46, %v583_v45 }
 0x2ca   : > { %v691_v48 = vpop.f32.mrf.mxu1 }
 0x2cb   : > { %v693_v2 = vmax.f32 %v677_v47, 0.0 }
 0x2cd   : > { %v713_v49 = vpack.c.bf16 %v693_v2, %v693_v2  ;;  %v1240_v54 = vpop.eup %1239 }
 0x2ce   : > { %v697_v55 = vadd.f32 1.0, %v1240_v54 }
 0x2cf   : > { %790 = vmatmul.bf16.vlgmr.msrb.gmra.mxu0 %v713_v49 }
 0x2d0   : > { %v678_v50 = vpop.f32.mrf.mxu3  ;;  %1241 = vrcp.f32 %v697_v55  ;;  %v709_v62 = vand.u32 2147483648, %v697_v55  ;;  %vm703_vm7 = vweird.f32 %v697_v55  ;;  %v707_v63 = vand.u32 2147483647, %v697_v55 }
 0x2d2   : > { %v710_v4 = vor.u32 1.1754944e-38, %v709_v62  ;;  %vm708_vm9 = vcmp.eq.f32.partialorder %v707_v63, 8.507059e+37 }
 0x2d6   : > { %v1242_v56 = vpop.eup %1241 }
 0x2d7   : > { %v699_v57 = vmul.f32 %v1242_v56, %v697_v55  ;;  %vm704_vm6 = vweird.f32 %v1242_v56 }
 0x2d8   : > { %vm705_vm8 = vmor %vm703_vm7, %vm704_vm6 }
 0x2d9   : > { %v700_v58 = vsub.f32 1.0, %v699_v57 }
 0x2db   : > { %v701_v59 = vmul.f32 %v1242_v56, %v700_v58 }
 0x2dd   : > { %v702_v60 = vadd.f32 %v1242_v56, %v701_v59 }
 0x2df   : > { %v706_v1 = vsel %vm705_vm8, %v1242_v56, %v702_v60 }
 0x2e0   : > { %v711_v6 = vsel %vm708_vm9, %v710_v4, %v706_v1 }
 0x34c   : > { %v791_v0 = vpop.f32.mrf.mxu0 }
 0x34d   : > { %v792_v3 = vadd.f32 %v1230_v61, %v791_v0 }
 0x34f   : > { %v795_v5 = vsub.f32 %v792_v3, %v563_v37 }
 0x351   : > { %v796_v7 = vmul.f32 %v795_v5, %v711_v6 }
 0x353   : > { %v797_v8 = vadd.f32 %v796_v7, %v563_v37 }
 0x354   : > { %v793_v9 = vpop.f32.mrf.mxu0 }
 0x355   : > { %v798_v10 = vpack.c.bf16 %v797_v8, %v797_v8 }
 0x357   : > { %799 = vst [vmem:[%s400_s14] sm:$0xf] %v798_v10 }
 0x358   : > { %1420 = shalt.err (!%p1417_p13)
}
 0x359   : > { %1140 = dma.vmem_to_hbm [thread:$0]  (%p1630_p0), %s815_s24, 64, %s817_s11, %s801_s30  }
 0x35a PF: > { %s828_s19 = sand.u32 1, %s1463_s27   ;;  %p1160_p2 = pnand %p945_p4, %p1637_p6 }
 0x35b   : > { %s829_s21 = scalar_lea.sflag [#allocation4], %s828_s19 }
 0x35c   : > { %p1161_p5 = pneg %p1160_p2 }
 0x35e   : > { %1458 = dma.done.wait (%p1161_p5), %s829_s21, 64  }
 0x35f   : > { %1460 = vsyncadd (%p1161_p5), %s829_s21, 4294967232  ;;  %s26_s10 = sadd.s32 1, %s1483_s10   ;;  %s1745_s27 = smov %s1467_s28 }
 0x360   : > { %p23_p7 = scmp.ge.s32.totalorder %s26_s10, 4   ;;  %s1746_s28 = smov %s1471_s29 }
 0x361   : > { %s1747_s29 = smov %s1635_s15  ;;  %s1748_s30 = smov %s1479_s9 }
 0x362   : > { %s1749_s9 = smov %s1751_s13  ;;  %25 = sbr.rel (!%p23_p7) target bundleno = 12 (0xc), region = 115 }
 0x367   :  { %835 = vsyncpa [#allocation3], 1 }
 0x368   :  { %837 = vsyncpa [#allocation3 + $0x1], 1 }
 0x369   :  { %838 = vsyncpa [#allocation6], 1 }
 0x36a   :  { %839 = vsyncpa [#allocation9], 1 }
 0x36b   :  { %840 = vsyncpa [#allocation4], 1 }
 0x36c   :  { %842 = vsyncpa [#allocation4 + $0x1], 1 }

</bundles_post_ra>
